<compile_context>
chip_gen: v6e
topology: v6e:2x2x1
jax: 0.10.0
libtpu: 0.0.40
codegen_flags: <defaults>
</compile_context>

<pallas_src>
import functools

import jax
import jax.numpy as jnp
from jax import lax
from jax.experimental import pallas as pl
from jax.experimental.pallas import tpu as pltpu


def _nn_linear_kernel(x_ref, w_ref, o_ref, acc_ref):
    # x_ref: (tm, tk), w_ref: (tn, tk), o_ref: (tm, tn), acc_ref: (tm, tn) f32
    @pl.when(pl.program_id(2) == 0)
    def _init():
        acc_ref[...] = jnp.zeros_like(acc_ref)

    # ReLU(W) on the VPU (slack under the MXU); scalar constant avoids a zero tile.
    w_nonneg = jnp.maximum(w_ref[...], 0.0)

    # y += x @ relu(W).T, expressed as a contraction of K against K so the
    # weight tile is fed to the MXU in its natural (out_dim, in_dim) layout.
    # TODO(synk): optionally cast x / w_nonneg to bf16 here on v6e/v7x for
    # ~2-3x MXU throughput (results then differ from f32 ref at ~1e-2 rel).
    acc_ref[...] += lax.dot_general(
        x_ref[...],
        w_nonneg,
        dimension_numbers=(((1,), (1,)), ((), ())),
        preferred_element_type=jnp.float32,
    )

    @pl.when(pl.program_id(2) == pl.num_programs(2) - 1)
    def _finalize():
        o_ref[...] = acc_ref[...].astype(o_ref.dtype)


def _round_up(x, m):
    return (x + m - 1) // m * m


@functools.partial(jax.jit, static_argnames=("tm", "tn", "tk"))
def linear_with_nonnegative_weights(x, w, *, tm=256, tn=256, tk=512):
    """x: (B, in_dim); w: (out_dim, in_dim)  ->  (B, out_dim).

    Computes x @ relu(w).T entirely inside a tiled Pallas kernel.
    """
    B, in_dim = x.shape
    out_dim, in_dim_w = w.shape
    assert in_dim == in_dim_w, "in_dim mismatch between input and weight"

    # Pad to vreg/MXU friendly sizes: M -> 8 (sublane), N/K -> 128 (lane).
    Mp = _round_up(B, 8)
    Np = _round_up(out_dim, 128)
    Kp = _round_up(in_dim, 128)

    # Clamp tiles to the (padded) problem, then re-pad so tiles divide evenly.
    tm = min(tm, Mp)
    tn = min(tn, Np)
    tk = min(tk, Kp)
    Mp = _round_up(Mp, tm)
    Np = _round_up(Np, tn)
    Kp = _round_up(Kp, tk)

    # Zero padding is semantics-preserving: padded K columns contribute
    # x_pad * relu(0) = 0; padded M rows / N columns are sliced off below.
    x_p = x
    if (Mp, Kp) != (B, in_dim):
        x_p = jnp.pad(x, ((0, Mp - B), (0, Kp - in_dim)))
    w_p = w
    if (Np, Kp) != (out_dim, in_dim):
        w_p = jnp.pad(w, ((0, Np - out_dim), (0, Kp - in_dim)))

    out_padded = pl.pallas_call(
        _nn_linear_kernel,
        out_shape=jax.ShapeDtypeStruct((Mp, Np), x.dtype),
        grid_spec=pltpu.PrefetchScalarGridSpec(
            num_scalar_prefetch=0,
            grid=(Mp // tm, Np // tn, Kp // tk),
            in_specs=[
                pl.BlockSpec((tm, tk), lambda i, j, k: (i, k)),   # x tile
                pl.BlockSpec((tn, tk), lambda i, j, k: (j, k)),   # w tile
            ],
            out_specs=pl.BlockSpec((tm, tn), lambda i, j, k: (i, j)),
            scratch_shapes=[pltpu.VMEM((tm, tn), jnp.float32)],
        ),
        compiler_params=pltpu.CompilerParams(
            dimension_semantics=("parallel", "parallel", "arbitrary"),
        ),
    )(x_p, w_p)

    return out_padded[:B, :out_dim]


def reference(x, w):
    return x @ jnp.maximum(w, 0.0).T


if __name__ == "__main__":
    key = jax.random.PRNGKey(0)
    kx, kw = jax.random.split(key)

    # Small shapes consistent with the module's forward: (batch, in_dim) input,
    # (out_dim, in_dim) weight.
    batch, in_dim, out_dim = 8, 32, 16

    x = jax.random.normal(kx, (batch, in_dim), dtype=jnp.float32)
    w = jax.random.normal(kw, (out_dim, in_dim), dtype=jnp.float32)

    y = linear_with_nonnegative_weights(x, w)
    y = jax.block_until_ready(y)

    y_ref = reference(x, w)
    assert y.shape == (batch, out_dim)
    assert jnp.allclose(y, y_ref, atol=1e-5, rtol=1e-5), "mismatch vs reference"

    print("KERNEL_OK")
</pallas_src>

<mosaic_0001>
module attributes {stable_mosaic.version = 11 : i64} {
  func.func @_nn_linear_kernel(%arg0: i32, %arg1: i32, %arg2: i32, %arg3: memref<8x128xf32, #tpu.memory_space<vmem>>, %arg4: memref<128x128xf32, #tpu.memory_space<vmem>>, %arg5: memref<8x128xf32, #tpu.memory_space<vmem>>, %arg6: memref<8x128xf32, #tpu.memory_space<vmem>>) attributes {dimension_semantics = [#tpu.dimension_semantics<parallel>, #tpu.dimension_semantics<parallel>, #tpu.dimension_semantics<arbitrary>], iteration_bounds = array<i64: 1, 1, 1>, scalar_prefetch = 0 : i64, scratch_operands = 1 : i64, tpu.core_type = #tpu.core_type<tc>, window_params = [{transform_indices = @transform_0, window_bounds = array<i64: 8, 128>}, {transform_indices = @transform_1, window_bounds = array<i64: 128, 128>}, {transform_indices = @transform_2, window_bounds = array<i64: 8, 128>}]} {
    %c0_i32 = arith.constant 0 : i32
    %0 = arith.cmpi eq, %arg2, %c0_i32 : i32
    %1 = arith.extui %0 : i1 to i32
    %c0_i32_0 = arith.constant 0 : i32
    %2 = arith.cmpi ne, %1, %c0_i32_0 : i32
    scf.if %2 {
      %cst_11 = arith.constant 0.000000e+00 : f32
      %14 = vector.broadcast %cst_11 : f32 to vector<8x128xf32>
      %c0_12 = arith.constant 0 : index
      %c0_13 = arith.constant 0 : index
      %15 = vector.load %arg6[%c0_12, %c0_13] : memref<8x128xf32, #tpu.memory_space<vmem>>, vector<8x128xf32>
      tpu.vector_store %arg6[%c0_12, %c0_13], %14 {strides = array<i32>} : memref<8x128xf32, #tpu.memory_space<vmem>>, vector<8x128xf32>,
    } else {
    }
    %c0 = arith.constant 0 : index
    %c0_1 = arith.constant 0 : index
    %3 = vector.load %arg4[%c0, %c0_1] : memref<128x128xf32, #tpu.memory_space<vmem>>, vector<128x128xf32>
    %cst = arith.constant 0.000000e+00 : f32
    %4 = vector.broadcast %cst : f32 to vector<128x128xf32>
    %5 = arith.maximumf %3, %4 : vector<128x128xf32>
    %c0_2 = arith.constant 0 : index
    %c0_3 = arith.constant 0 : index
    %6 = vector.load %arg6[%c0_2, %c0_3] : memref<8x128xf32, #tpu.memory_space<vmem>>, vector<8x128xf32>
    %c0_4 = arith.constant 0 : index
    %c0_5 = arith.constant 0 : index
    %7 = vector.load %arg3[%c0_4, %c0_5] : memref<8x128xf32, #tpu.memory_space<vmem>>, vector<8x128xf32>
    %cst_6 = arith.constant dense<0.000000e+00> : vector<8x128xf32>
    %8 = tpu.matmul %7, %5, %cst_6 {dimension_numbers = #tpu.dot_dimension_numbers<[1], [1], [0], [0], [0, 0, 1, 0], [], []>} : vector<8x128xf32>, vector<128x128xf32>, vector<8x128xf32> -> vector<8x128xf32>
    %9 = arith.addf %6, %8 : vector<8x128xf32>
    %c0_7 = arith.constant 0 : index
    %c0_8 = arith.constant 0 : index
    %10 = vector.load %arg6[%c0_7, %c0_8] : memref<8x128xf32, #tpu.memory_space<vmem>>, vector<8x128xf32>
    tpu.vector_store %arg6[%c0_7, %c0_8], %9 {strides = array<i32>} : memref<8x128xf32, #tpu.memory_space<vmem>>, vector<8x128xf32>,
    %c0_i32_9 = arith.constant 0 : i32
    %11 = arith.cmpi eq, %arg2, %c0_i32_9 : i32
    %12 = arith.extui %11 : i1 to i32
    %c0_i32_10 = arith.constant 0 : i32
    %13 = arith.cmpi ne, %12, %c0_i32_10 : i32
    scf.if %13 {
      %c0_11 = arith.constant 0 : index
      %c0_12 = arith.constant 0 : index
      %14 = vector.load %arg6[%c0_11, %c0_12] : memref<8x128xf32, #tpu.memory_space<vmem>>, vector<8x128xf32>
      %c0_13 = arith.constant 0 : index
      %c0_14 = arith.constant 0 : index
      %15 = vector.load %arg5[%c0_13, %c0_14] : memref<8x128xf32, #tpu.memory_space<vmem>>, vector<8x128xf32>
      tpu.vector_store %arg5[%c0_13, %c0_14], %14 {strides = array<i32>} : memref<8x128xf32, #tpu.memory_space<vmem>>, vector<8x128xf32>,
    } else {
    }
    return
  }
  func.func @transform_0(%arg0: i32, %arg1: i32, %arg2: i32) -> (i32, i32) {
    %c0_i32 = arith.constant 0 : i32
    return %arg0, %arg2 : i32, i32
  }
  func.func @transform_1(%arg0: i32, %arg1: i32, %arg2: i32) -> (i32, i32) {
    %c0_i32 = arith.constant 0 : i32
    return %arg1, %arg2 : i32, i32
  }
  func.func @transform_2(%arg0: i32, %arg1: i32, %arg2: i32) -> (i32, i32) {
    %c0_i32 = arith.constant 0 : i32
    return %arg0, %arg1 : i32, i32
  }
}

</mosaic_0001>

<bundles_post_ra>
// kernel: linear_with_nonnegative_weights.1
= control target key start
LH: loop header
LB: loop body
LE: loop exit
PB: predicated region body
PF: predicated region fallthrough
CT: control target
= control target key end

     0   :  { %v219_v2 = vmov 0.0   ;;  %vm220_vm0 = vmmov 0   ;;  %s308_s0 = inlined_call_operand.vmem [shape: f32[8,128], index: 0, kind: input, shape index: {}]   ;;  %s309_s1 = inlined_call_operand.vmem [shape: f32[128,128], index: 1, kind: input, shape index: {}]   ;;  %s310_s2 = inlined_call_operand.hbm [shape: f32[8,128], index: 2, kind: output, shape index: {}]  }
   0x1   :  { %v32_v0 = vld [vmem:[%s309_s1 + $0x78] sm:$0xff]  ;;  %v31_v1 = vld [vmem:[%s309_s1 + $0x70] sm:$0xff]  ;;  %159 = vmatprep.subr.mxu0 %v219_v2  ;;  %191 = vmatprep.mubr.msk.f32.mxu0 %vm220_vm0, %v219_v2  ;;  %v30_v5 = vld [vmem:[%s309_s1 + $0x68] sm:$0xff] }
   0x2   :  { %v48_v3 = vmax.f32 %v32_v0, 0.0  ;;  %v47_v4 = vmax.f32 %v31_v1, 0.0 }
   0x4   :  { %160 = vmatpush3.xpose.msra.mxu0 %v48_v3 }
   0x5   :  { %161 = vmatprep.subr.mxu0 %v219_v2 }
   0x6   :  { %7 = vsyncpa [#allocation4], 0  ;;  %v46_v6 = vmax.f32 %v30_v5, 0.0  ;;  %v29_v7 = vld [vmem:[%s309_s1 + $0x60] sm:$0xff]  ;;  %v28_v9 = vld [vmem:[%s309_s1 + $0x58] sm:$0xff]  ;;  %s221_s15 = smov [#allocation3]  }
   0x7   :  { %v45_v8 = vmax.f32 %v29_v7, 0.0  ;;  %v44_v10 = vmax.f32 %v28_v9, 0.0  ;;  %v27_v11 = vld [vmem:[%s309_s1 + $0x50] sm:$0xff]  ;;  %v26_v13 = vld [vmem:[%s309_s1 + $0x48] sm:$0xff]  ;;  %v25_v15 = vld [vmem:[%s309_s1 + $0x40] sm:$0xff]  ;;  %s134_s16 = sshll.u32 %s221_s15, 4  ;;  %s135_s16 = int_to_ptr.vmem [resolvable:$true] %s134_s16 }
   0x8   :  { %162 = vmatpush3.xpose.msra.mxu0 %v47_v4  ;;  %v43_v12 = vmax.f32 %v27_v11, 0.0  ;;  %v42_v14 = vmax.f32 %v26_v13, 0.0  ;;  %v41_v16 = vmax.f32 %v25_v15, 0.0  ;;  %v24_v17 = vld [vmem:[%s309_s1 + $0x38] sm:$0xff]  ;;  %v23_v19 = vld [vmem:[%s309_s1 + $0x30] sm:$0xff]  ;;  %v22_v21 = vld [vmem:[%s309_s1 + $0x28] sm:$0xff]  ;;  %p202_p1 = scmp.lt.s32.totalorder %s135_s16, %s135_s16 }
   0x9   :  { %163 = vmatprep.subr.mxu0 %v219_v2  ;;  %v40_v18 = vmax.f32 %v24_v17, 0.0  ;;  %v39_v20 = vmax.f32 %v23_v19, 0.0  ;;  %v38_v22 = vmax.f32 %v22_v21, 0.0  ;;  %v21_v23 = vld [vmem:[%s309_s1 + $0x20] sm:$0xff]  ;;  %v20_v25 = vld [vmem:[%s309_s1 + $0x18] sm:$0xff]  ;;  %v19_v27 = vld [vmem:[%s309_s1 + $0x10] sm:$0xff] }
   0xa   :  { %v37_v24 = vmax.f32 %v21_v23, 0.0  ;;  %v36_v26 = vmax.f32 %v20_v25, 0.0  ;;  %v35_v28 = vmax.f32 %v19_v27, 0.0  ;;  %v18_v29 = vld [vmem:[%s309_s1 + $0x8] sm:$0xff]  ;;  %v17_v31 = vld [vmem:[%s309_s1] sm:$0xff]  ;;  %s197_s17 = scalar_lea.vmem %s135_s16, 128 }
   0xb   :  { %v34_v30 = vmax.f32 %v18_v29, 0.0  ;;  %v33_v32 = vmax.f32 %v17_v31, 0.0  ;;  %v50_v33 = vld [vmem:[%s308_s0] sm:$0xff]  ;;  %p198_p0 = scmp.ne.s32.totalorder %s135_s16, %s197_s17  ;;  %p203_p2 = scmp.lt.s32.totalorder %s197_s17, %s197_s17 }
   0xc   :  { %164 = vmatpush3.xpose.msra.mxu0 %v46_v6 }
   0xd   :  { %165 = vmatprep.subr.mxu0 %v219_v2  ;;  %p204_p3 = por %p203_p2, %p202_p1 }
   0xf   :  { %p205_p4 = pnand %p204_p3, %p198_p0 }
  0x10   :  { %166 = vmatpush3.xpose.msra.mxu0 %v45_v8 }
  0x11   :  { %167 = vmatprep.subr.mxu0 %v219_v2 }
  0x14   :  { %168 = vmatpush3.xpose.msra.mxu0 %v44_v10 }
  0x15   :  { %169 = vmatprep.subr.mxu0 %v219_v2 }
  0x18   :  { %170 = vmatpush3.xpose.msra.mxu0 %v43_v12 }
  0x19   :  { %171 = vmatprep.subr.mxu0 %v219_v2 }
  0x1c   :  { %172 = vmatpush3.xpose.msra.mxu0 %v42_v14 }
  0x1d   :  { %173 = vmatprep.subr.mxu0 %v219_v2 }
  0x20   :  { %174 = vmatpush3.xpose.msra.mxu0 %v41_v16 }
  0x21   :  { %175 = vmatprep.subr.mxu0 %v219_v2 }
  0x24   :  { %176 = vmatpush3.xpose.msra.mxu0 %v40_v18 }
  0x25   :  { %177 = vmatprep.subr.mxu0 %v219_v2 }
  0x28   :  { %178 = vmatpush3.xpose.msra.mxu0 %v39_v20 }
  0x29   :  { %179 = vmatprep.subr.mxu0 %v219_v2 }
  0x2c   :  { %180 = vmatpush3.xpose.msra.mxu0 %v38_v22 }
  0x2d   :  { %181 = vmatprep.subr.mxu0 %v219_v2 }
  0x30   :  { %182 = vmatpush3.xpose.msra.mxu0 %v37_v24 }
  0x31   :  { %183 = vmatprep.subr.mxu0 %v219_v2 }
  0x34   :  { %184 = vmatpush3.xpose.msra.mxu0 %v36_v26 }
  0x35   :  { %185 = vmatprep.subr.mxu0 %v219_v2 }
  0x38   :  { %186 = vmatpush3.xpose.msra.mxu0 %v35_v28 }
  0x39   :  { %187 = vmatprep.subr.mxu0 %v219_v2 }
  0x3c   :  { %188 = vmatpush3.xpose.msra.mxu0 %v34_v30 }
  0x3d   :  { %189 = vmatprep.subr.mxu0 %v219_v2 }
  0x40   :  { %190 = vmatpush3.xpose.msra.mxu0 %v33_v32 }
  0x43   :  { %192 = vmatmul.mubr.f32.vlgmr.msra.gmra.mxu0 %v50_v33 }
 0x103   :  { %v117_v34 = vpop.f32.mrf.mxu0 }
 0x104   :  { %127 = vst [vmem:[#allocation3] sm:$0xff] %v117_v34 }
 0x105   :  { %v193_v35 = vpop.f32.mrf.mxu0 }
 0x106   :  { %208 = shalt.err (!%p205_p4)
}
 0x107   :  { %137 = dma.vmem_to_hbm [thread:$0]  %s135_s16, 128, %s310_s2, [#allocation4]  }
 0x108   :  { %217 = dma.done.wait [#allocation4], 128  }
 0x109   :  { %218 = vsyncadd [#allocation4], 4294967168 }
 0x10a   :  { %141 = vsyncpa [#allocation4], 1 }

</bundles_post_ra>
